<compile_context>
chip_gen: v5e
topology: v5e:2x2
jax: 0.10.0
libtpu: 0.0.40
codegen_flags: <defaults>
</compile_context>

<pallas_src>
import jax
import jax.numpy as jnp
from jax.experimental import pallas as pl
from jax.experimental.pallas import tpu as pltpu

_LANE = 128
_SUBLANE = 8
# Budget (bytes) under which the whole (padded) problem is run as one grid step.
_SINGLE_BLOCK_BYTES = 4 * 1024 * 1024


def _round_up(x, m):
    return (x + m - 1) // m * m


def _pad_axis(x, target, axis):
    pad = target - x.shape[axis]
    if pad == 0:
        return x
    widths = [(0, 0)] * x.ndim
    widths[axis] = (0, pad)
    return jnp.pad(x, widths)


# ----------------------------------------------------------------------------
# Kernels
# ----------------------------------------------------------------------------
def _linear_bias_noacc_kernel(x_ref, w_ref, b_ref, o_ref):
    """One-shot block: o = x @ w + b (no reduction grid axis, f32 accumulation)."""
    o_ref[...] = (
        jnp.dot(x_ref[...], w_ref[...], preferred_element_type=jnp.float32)
        + b_ref[...]
    ).astype(o_ref.dtype)


def _linear_bias_acc_kernel(x_ref, w_ref, b_ref, o_ref, acc_ref):
    """Tiled block; K is the reduction grid axis (axis 2, 'arbitrary')."""
    k = pl.program_id(2)

    @pl.when(k == 0)
    def _():
        acc_ref[...] = jnp.zeros_like(acc_ref)

    acc_ref[...] += jnp.dot(x_ref[...], w_ref[...],
                            preferred_element_type=jnp.float32)

    @pl.when(k == pl.num_programs(2) - 1)
    def _():
        o_ref[...] = (acc_ref[...] + b_ref[...]).astype(o_ref.dtype)


# ----------------------------------------------------------------------------
# Shared-head path (individual=False)
# ----------------------------------------------------------------------------
def linear_pallas(x2d, w_pad, b_pad):
    """x2d: [M, K] (unpadded). w_pad: [Kp, Np], b_pad: [1, Np] (zero-padded at init).

    Returns the padded output [Mp, Np]; the caller slices [:M, :N].
    """
    M, K = x2d.shape
    Kp, Np = w_pad.shape
    Mp = _round_up(M, _SUBLANE)
    xp = _pad_axis(_pad_axis(x2d, Mp, 0), Kp, 1)   # no-ops when already aligned
    itemsize = xp.dtype.itemsize

    total_bytes = (Mp * Kp + Kp * Np + Mp * Np + Np) * itemsize
    if total_bytes <= _SINGLE_BLOCK_BYTES:
        # Single grid step: whole problem lives in VMEM. No K loop, no scratch,
        # no pl.when gates -> minimal overhead for small prediction heads.
        return pl.pallas_call(
            _linear_bias_noacc_kernel,
            out_shape=jax.ShapeDtypeStruct((Mp, Np), x2d.dtype),
            grid_spec=pltpu.PrefetchScalarGridSpec(
                num_scalar_prefetch=0,
                grid=(1,),
                in_specs=[
                    pl.BlockSpec((Mp, Kp), lambda i: (0, 0)),
                    pl.BlockSpec((Kp, Np), lambda i: (0, 0)),
                    pl.BlockSpec((1, Np), lambda i: (0, 0)),
                ],
                out_specs=pl.BlockSpec((Mp, Np), lambda i: (0, 0)),
            ),
            compiler_params=pltpu.CompilerParams(
                dimension_semantics=("arbitrary",)),
        )(xp, w_pad, b_pad)

    # Tiled fallback for large head_dim / forecast_len / batch.
    if Mp >= 128:
        tm = 128
        Mp2 = _round_up(Mp, tm)
        xp = _pad_axis(xp, Mp2, 0)
        Mp = Mp2
    else:
        tm = Mp                                   # full extent, multiple of 8
    tk = 512 if Kp % 512 == 0 else (256 if Kp % 256 == 0 else 128)
    tn = 256 if Np % 256 == 0 else 128            # >=2 N tiles helps v7x megacore
    grid = (Mp // tm, Np // tn, Kp // tk)
    # VMEM use: 2 * (tm*tk + tk*tn + tm*tn) * 4B + tm*tn*4B  <~ 2 MiB -> well under
    # the scoped-VMEM default on v5e/v6e/v7x, so no vmem_limit_bytes override needed.
    return pl.pallas_call(
        _linear_bias_acc_kernel,
        out_shape=jax.ShapeDtypeStruct((Mp, Np), x2d.dtype),
        grid_spec=pltpu.PrefetchScalarGridSpec(
            num_scalar_prefetch=0,
            grid=grid,
            in_specs=[
                pl.BlockSpec((tm, tk), lambda i, j, k: (i, k)),
                pl.BlockSpec((tk, tn), lambda i, j, k: (k, j)),
                pl.BlockSpec((1, tn), lambda i, j, k: (0, j)),
            ],
            out_specs=pl.BlockSpec((tm, tn), lambda i, j, k: (i, j)),
            scratch_shapes=[pltpu.VMEM((tm, tn), jnp.float32)],
        ),
        compiler_params=pltpu.CompilerParams(
            dimension_semantics=("parallel", "parallel", "arbitrary")),
    )(xp, w_pad, b_pad)


# ----------------------------------------------------------------------------
# Per-variable path (individual=True)
# ----------------------------------------------------------------------------
def linear_pallas_per_var(x_vbk, w_pad, b_pad):
    """x_vbk: [V, B, K] (unpadded). w_pad: [V, Kp, Np], b_pad: [V, 1, Np].

    Returns the padded output [V, Bp, Np]; the caller slices [:, :B, :N].
    """
    V, B, K = x_vbk.shape
    _, Kp, Np = w_pad.shape
    Bp = _round_up(B, _SUBLANE)                   # avoid 2-row masked sublane tiles
    xp = _pad_axis(_pad_axis(x_vbk, Bp, 1), Kp, 2)
    itemsize = xp.dtype.itemsize

    per_step_bytes = (Bp * Kp + Kp * Np + Bp * Np + Np) * itemsize
    if 2 * per_step_bytes <= _SINGLE_BLOCK_BYTES:  # x2: double-buffered across V
        # One grid step per variable: full K and N in one block, no K loop.
        return pl.pallas_call(
            _linear_bias_noacc_kernel,
            out_shape=jax.ShapeDtypeStruct((V, Bp, Np), x_vbk.dtype),
            grid_spec=pltpu.PrefetchScalarGridSpec(
                num_scalar_prefetch=0,
                grid=(V,),
                in_specs=[
                    pl.BlockSpec((None, Bp, Kp), lambda v: (v, 0, 0)),
                    pl.BlockSpec((None, Kp, Np), lambda v: (v, 0, 0)),
                    pl.BlockSpec((None, 1, Np), lambda v: (v, 0, 0)),
                ],
                out_specs=pl.BlockSpec((None, Bp, Np), lambda v: (v, 0, 0)),
            ),
            compiler_params=pltpu.CompilerParams(
                dimension_semantics=("parallel",)),
        )(xp, w_pad, b_pad)

    # Fallback: tile N and K (large head_dim / forecast_len), f32 accumulator.
    tn = 256 if Np % 256 == 0 else 128
    tk = 512 if Kp % 512 == 0 else (256 if Kp % 256 == 0 else 128)
    grid = (V, Np // tn, Kp // tk)
    return pl.pallas_call(
        _linear_bias_acc_kernel,
        out_shape=jax.ShapeDtypeStruct((V, Bp, Np), x_vbk.dtype),
        grid_spec=pltpu.PrefetchScalarGridSpec(
            num_scalar_prefetch=0,
            grid=grid,
            in_specs=[
                pl.BlockSpec((None, Bp, tk), lambda v, j, k: (v, 0, k)),
                pl.BlockSpec((None, tk, tn), lambda v, j, k: (v, k, j)),
                pl.BlockSpec((None, 1, tn), lambda v, j, k: (v, 0, j)),
            ],
            out_specs=pl.BlockSpec((None, Bp, tn), lambda v, j, k: (v, 0, j)),
            scratch_shapes=[pltpu.VMEM((Bp, tn), jnp.float32)],
        ),
        compiler_params=pltpu.CompilerParams(
            dimension_semantics=("parallel", "parallel", "arbitrary")),
    )(xp, w_pad, b_pad)


# ----------------------------------------------------------------------------
# Module wrapper
# ----------------------------------------------------------------------------
class PredictionHead:
    """JAX/Pallas port of TimeSeek_cls.PredictionHead (inference mode)."""

    def __init__(self, individual, n_vars, d_model, num_patch, forecast_len,
                 head_dropout=0.0, flatten=False, *, key=None, dtype=jnp.float32):
        self.individual = individual
        self.n_vars = n_vars
        self.forecast_len = forecast_len
        head_dim = d_model * num_patch
        self.head_dim = head_dim

        if key is None:
            key = jax.random.PRNGKey(42)
        bound = 1.0 / (head_dim ** 0.5)            # nn.Linear default init (deterministic)
        kw, kb = jax.random.split(key)

        Kp = _round_up(head_dim, _LANE)
        Np = _round_up(forecast_len, _LANE)
        # Note: if accuracy permits, storing weights in bf16 halves the dominant
        # W[K,N] HBM stream (f32 accumulation is kept via preferred_element_type).
        if individual:
            # stored as [V, K, N] (transposed relative to torch's per-variable [N, K])
            self.weight = jax.random.uniform(
                kw, (n_vars, head_dim, forecast_len), dtype, -bound, bound)
            self.bias = jax.random.uniform(
                kb, (n_vars, forecast_len), dtype, -bound, bound)
            # pad once at init (hoisted out of the per-call path)
            self._w_pad = _pad_axis(_pad_axis(self.weight, Kp, 1), Np, 2)
            self._b_pad = _pad_axis(self.bias, Np, 1).reshape(n_vars, 1, Np)
        else:
            self.weight = jax.random.uniform(
                kw, (head_dim, forecast_len), dtype, -bound, bound)
            self.bias = jax.random.uniform(
                kb, (forecast_len,), dtype, -bound, bound)
            self._w_pad = _pad_axis(_pad_axis(self.weight, Kp, 0), Np, 1)
            self._b_pad = _pad_axis(self.bias.reshape(1, forecast_len), Np, 1)

    def __call__(self, x):
        # x: [bs, nvars, d_model, num_patch]
        bs, nvars, d_model, num_patch = x.shape
        assert nvars == self.n_vars
        K = d_model * num_patch
        assert K == self.head_dim
        N = self.forecast_len

        if self.individual:
            x_bvk = x.reshape(bs, nvars, K)                 # Flatten(start_dim=-2)
            x_vbk = jnp.transpose(x_bvk, (1, 0, 2))         # [V, B, K]
            out_pad = linear_pallas_per_var(x_vbk, self._w_pad, self._b_pad)
            out = jnp.transpose(out_pad[:, :bs, :N], (1, 0, 2))   # [B, V, N]
        else:
            x2d = x.reshape(bs * nvars, K)                  # Flatten(start_dim=-2)
            out_pad = linear_pallas(x2d, self._w_pad, self._b_pad)
            out = out_pad[:bs * nvars, :N].reshape(bs, nvars, N)  # [B, V, N]

        # TODO(synk): train-mode dropout (head_dropout > 0) not implemented (identity).
        # .transpose(2, 1) in torch -> [bs, forecast_len, nvars]
        return jnp.transpose(out, (0, 2, 1))


if __name__ == "__main__":
    bs, n_vars, d_model, num_patch, forecast_len = 2, 4, 32, 8, 96

    key = jax.random.PRNGKey(0)
    kx, kparam_s, kparam_i, kbig = jax.random.split(key, 4)
    x = jax.random.normal(kx, (bs, n_vars, d_model, num_patch), jnp.float32)

    # ---- shared head (individual=False), single-block fast path ----
    head = PredictionHead(False, n_vars, d_model, num_patch, forecast_len,
                          key=kparam_s)
    y = jax.block_until_ready(head(x))
    assert y.shape == (bs, forecast_len, n_vars), y.shape
    ref = jnp.einsum("bvk,kn->bvn",
                     x.reshape(bs, n_vars, d_model * num_patch),
                     head.weight) + head.bias
    ref = jnp.transpose(ref, (0, 2, 1))
    assert jnp.allclose(y, ref, atol=1e-4, rtol=1e-4)

    # ---- individual heads (individual=True), per-variable fast path ----
    head_i = PredictionHead(True, n_vars, d_model, num_patch, forecast_len,
                            key=kparam_i)
    y_i = jax.block_until_ready(head_i(x))
    assert y_i.shape == (bs, forecast_len, n_vars), y_i.shape
    ref_i = jnp.einsum("bvk,vkn->bvn",
                       x.reshape(bs, n_vars, d_model * num_patch),
                       head_i.weight) + head_i.bias[None, :, :]
    ref_i = jnp.transpose(ref_i, (0, 2, 1))
    assert jnp.allclose(y_i, ref_i, atol=1e-4, rtol=1e-4)

    # ---- tiled fallback path (large problem exceeding the single-block budget) ----
    kx2, kw2, kb2 = jax.random.split(kbig, 3)
    Mb, Kb, Nb = 250, 2048, 512                     # -> tiled grid, M padded to 256
    xb = jax.random.normal(kx2, (Mb, Kb), jnp.float32)
    wb = jax.random.normal(kw2, (Kb, Nb), jnp.float32) * 0.02
    bb = jax.random.normal(kb2, (1, Nb), jnp.float32)
    yb = jax.block_until_ready(linear_pallas(xb, wb, bb))[:Mb, :Nb]
    refb = xb @ wb + bb
    assert jnp.allclose(yb, refb, atol=1e-2, rtol=1e-3)

    print("KERNEL_OK")
</pallas_src>

<mosaic_0001>
module attributes {stable_mosaic.version = 11 : i64} {
  func.func @_linear_bias_noacc_kernel(%arg0: i32, %arg1: memref<8x256xf32, #tpu.memory_space<vmem>>, %arg2: memref<256x128xf32, #tpu.memory_space<vmem>>, %arg3: memref<1x128xf32, #tpu.memory_space<vmem>>, %arg4: memref<8x128xf32, #tpu.memory_space<vmem>>) attributes {dimension_semantics = [#tpu.dimension_semantics<arbitrary>], iteration_bounds = array<i64: 1>, scalar_prefetch = 0 : i64, scratch_operands = 0 : i64, tpu.core_type = #tpu.core_type<tc>, window_params = [{pipeline_mode = #tpu.pipeline_mode<synchronous>, transform_indices = @transform_0, window_bounds = array<i64: 8, 256>}, {pipeline_mode = #tpu.pipeline_mode<synchronous>, transform_indices = @transform_1, window_bounds = array<i64: 256, 128>}, {pipeline_mode = #tpu.pipeline_mode<synchronous>, transform_indices = @transform_2, window_bounds = array<i64: 1, 128>}, {pipeline_mode = #tpu.pipeline_mode<synchronous>, transform_indices = @transform_3, window_bounds = array<i64: 8, 128>}]} {
    %c0 = arith.constant 0 : index
    %c0_0 = arith.constant 0 : index
    %0 = vector.load %arg1[%c0, %c0_0] : memref<8x256xf32, #tpu.memory_space<vmem>>, vector<8x256xf32>
    %c0_1 = arith.constant 0 : index
    %c0_2 = arith.constant 0 : index
    %1 = vector.load %arg2[%c0_1, %c0_2] : memref<256x128xf32, #tpu.memory_space<vmem>>, vector<256x128xf32>
    %cst = arith.constant dense<0.000000e+00> : vector<8x128xf32>
    %2 = tpu.matmul %0, %1, %cst {dimension_numbers = #tpu.dot_dimension_numbers<[1], [0], [0], [1], [0, 0, 1, 1], [], []>} : vector<8x256xf32>, vector<256x128xf32>, vector<8x128xf32> -> vector<8x128xf32>
    %c0_3 = arith.constant 0 : index
    %c0_4 = arith.constant 0 : index
    %3 = vector.load %arg3[%c0_3, %c0_4] : memref<1x128xf32, #tpu.memory_space<vmem>>, vector<1x128xf32>
    %4 = vector.broadcast %3 : vector<1x128xf32> to vector<8x128xf32>
    %5 = arith.addf %2, %4 : vector<8x128xf32>
    %c0_5 = arith.constant 0 : index
    %c0_6 = arith.constant 0 : index
    %6 = vector.load %arg4[%c0_5, %c0_6] : memref<8x128xf32, #tpu.memory_space<vmem>>, vector<8x128xf32>
    tpu.vector_store %arg4[%c0_5, %c0_6], %5 {strides = array<i32>} : memref<8x128xf32, #tpu.memory_space<vmem>>, vector<8x128xf32>,
    return
  }
  func.func @transform_0(%arg0: i32) -> (i32, i32) {
    %c0_i32 = arith.constant 0 : i32
    %c0_i32_0 = arith.constant 0 : i32
    %c0_i32_1 = arith.constant 0 : i32
    return %c0_i32, %c0_i32_0 : i32, i32
  }
  func.func @transform_1(%arg0: i32) -> (i32, i32) {
    %c0_i32 = arith.constant 0 : i32
    %c0_i32_0 = arith.constant 0 : i32
    %c0_i32_1 = arith.constant 0 : i32
    return %c0_i32, %c0_i32_0 : i32, i32
  }
  func.func @transform_2(%arg0: i32) -> (i32, i32) {
    %c0_i32 = arith.constant 0 : i32
    %c0_i32_0 = arith.constant 0 : i32
    %c0_i32_1 = arith.constant 0 : i32
    return %c0_i32, %c0_i32_0 : i32, i32
  }
  func.func @transform_3(%arg0: i32) -> (i32, i32) {
    %c0_i32 = arith.constant 0 : i32
    %c0_i32_0 = arith.constant 0 : i32
    %c0_i32_1 = arith.constant 0 : i32
    return %c0_i32, %c0_i32_0 : i32, i32
  }
}

</mosaic_0001>

<bundles_post_ra>
// kernel: tpu_custom_call.1
= control target key start
LH: loop header
LB: loop body
LE: loop exit
PB: predicated region body
PF: predicated region fallthrough
CT: control target
= control target key end

     0   :  { %8 = vsyncpa [#allocation3], 0  ;;  %s263_s0 = inlined_call_operand.hbm [shape: f32[8,256], index: 0, kind: input, shape index: {}]   ;;  %s264_s1 = inlined_call_operand.hbm [shape: f32[256,128], index: 1, kind: input, shape index: {}]   ;;  %s265_s2 = inlined_call_operand.vmem [shape: f32[1,128], index: 2, kind: input, shape index: {}]   ;;  %s266_s3 = inlined_call_operand.hbm [shape: f32[8,128], index: 3, kind: output, shape index: {}]  }
   0x1   :  { %9 = vsyncpa [#allocation6], 0 }
   0x2   :  { %10 = vsyncpa [#allocation4], 0  ;;  %s16_s14 = sshll.u32 %s263_s0, 4  ;;  %s226_s15 = smov [#allocation2]   ;;  %s17_s14 = int_to_ptr.hbm [resolvable:$true] %s16_s14 }
   0x3   :  { %s18_s16 = sshll.u32 %s226_s15, 4  ;;  %s26_s19 = sshll.u32 %s264_s1, 4  ;;  %s19_s16 = int_to_ptr.vmem [resolvable:$true] %s18_s16  ;;  %s27_s19 = int_to_ptr.hbm [resolvable:$true] %s26_s19 }
   0x4   :  { %21 = dma.hbm_to_vmem [thread:$0]  %s17_s14, 256, %s19_s16, [#allocation3]  }
   0x5   :  { %s227_s20 = smov [#allocation5]   ;;  %s228_s22 = smov 128  }
   0x6   :  { %s28_s21 = sshll.u32 %s227_s20, 4  ;;  %s229_s23 = smov 8   ;;  %s29_s21 = int_to_ptr.vmem [resolvable:$true] %s28_s21 }
   0x7   :  { %34 = dma.hbm_to_vmem [thread:$0]  %s27_s19, 4096, %s29_s21, [#allocation6], %s228_s22, %s228_s22, %s229_s23  }
   0x8   :  { %220 = dma.done.wait [#allocation3], 256  }
   0x9   :  { %221 = vsyncadd [#allocation3], 4294967040 }
   0xa   :  { %222 = dma.done.wait [#allocation6], 4096  }
   0xb   :  { %223 = vsyncadd [#allocation6], 4294963200  ;;  %v62_v0 = vld [vmem:[#allocation5 + $0x78] sm:$0xff]  ;;  %v61_v1 = vld [vmem:[#allocation5 + $0x70] sm:$0xff]  ;;  %s230_s24 = smov [#allocation7]   ;;  %s131_s28 = sshll.u32 %s266_s3, 4  ;;  %s132_s28 = int_to_ptr.hbm [resolvable:$true] %s131_s28 }
   0xc   :  { %v78_v2 = vld [vmem:[#allocation5 + $0xf8] sm:$0xff]  ;;  %83 = vmatpush.msra.mxu0 %v62_v0  ;;  %v77_v3 = vld [vmem:[#allocation5 + $0xf0] sm:$0xff]  ;;  %v60_v4 = vld [vmem:[#allocation5 + $0x68] sm:$0xff]  ;;  %s129_s25 = sshll.u32 %s230_s24, 4  ;;  %s130_s25 = int_to_ptr.vmem [resolvable:$true] %s129_s25 }
   0xd   :  { %103 = vmatpush.msra.mxu1 %v78_v2  ;;  %v76_v5 = vld [vmem:[#allocation5 + $0xe8] sm:$0xff]  ;;  %v59_v6 = vld [vmem:[#allocation5 + $0x60] sm:$0xff]  ;;  %v58_v8 = vld [vmem:[#allocation5 + $0x58] sm:$0xff] }
   0xe   :  { %84 = vmatpush.msra.mxu0 %v61_v1  ;;  %v75_v7 = vld [vmem:[#allocation5 + $0xe0] sm:$0xff]  ;;  %v74_v9 = vld [vmem:[#allocation5 + $0xd8] sm:$0xff]  ;;  %v57_v10 = vld [vmem:[#allocation5 + $0x50] sm:$0xff] }
   0xf   :  { %104 = vmatpush.msra.mxu1 %v77_v3  ;;  %v73_v11 = vld [vmem:[#allocation5 + $0xd0] sm:$0xff]  ;;  %v56_v12 = vld [vmem:[#allocation5 + $0x48] sm:$0xff]  ;;  %v55_v14 = vld [vmem:[#allocation5 + $0x40] sm:$0xff] }
  0x10   :  { %85 = vmatpush.msra.mxu0 %v60_v4  ;;  %v72_v13 = vld [vmem:[#allocation5 + $0xc8] sm:$0xff]  ;;  %v71_v15 = vld [vmem:[#allocation5 + $0xc0] sm:$0xff]  ;;  %v54_v16 = vld [vmem:[#allocation5 + $0x38] sm:$0xff] }
  0x11   :  { %105 = vmatpush.msra.mxu1 %v76_v5  ;;  %v70_v17 = vld [vmem:[#allocation5 + $0xb8] sm:$0xff]  ;;  %v53_v18 = vld [vmem:[#allocation5 + $0x30] sm:$0xff]  ;;  %v52_v20 = vld [vmem:[#allocation5 + $0x28] sm:$0xff] }
  0x12   :  { %86 = vmatpush.msra.mxu0 %v59_v6  ;;  %v69_v19 = vld [vmem:[#allocation5 + $0xb0] sm:$0xff]  ;;  %v68_v21 = vld [vmem:[#allocation5 + $0xa8] sm:$0xff]  ;;  %v51_v22 = vld [vmem:[#allocation5 + $0x20] sm:$0xff] }
  0x13   :  { %106 = vmatpush.msra.mxu1 %v75_v7  ;;  %v67_v23 = vld [vmem:[#allocation5 + $0xa0] sm:$0xff]  ;;  %v50_v24 = vld [vmem:[#allocation5 + $0x18] sm:$0xff]  ;;  %v49_v26 = vld [vmem:[#allocation5 + $0x10] sm:$0xff] }
  0x14   :  { %87 = vmatpush.msra.mxu0 %v58_v8  ;;  %v66_v25 = vld [vmem:[#allocation5 + $0x98] sm:$0xff]  ;;  %v65_v27 = vld [vmem:[#allocation5 + $0x90] sm:$0xff]  ;;  %v48_v28 = vld [vmem:[#allocation5 + $0x8] sm:$0xff] }
  0x15   :  { %107 = vmatpush.msra.mxu1 %v74_v9  ;;  %v64_v29 = vld [vmem:[#allocation5 + $0x88] sm:$0xff]  ;;  %v47_v30 = vld [vmem:[#allocation5] sm:$0xff]  ;;  %v45_v32 = vld [vmem:[#allocation2] sm:$0xff] }
  0x16   :  { %88 = vmatpush.msra.mxu0 %v57_v10  ;;  %v63_v31 = vld [vmem:[#allocation5 + $0x80] sm:$0xff]  ;;  %v46_v33 = vld [vmem:[#allocation2 + $0x8] sm:$0xff]  ;;  %v147_v34 = vld [vmem:[%s265_s2] ss:$0 sm:$0xff] }
  0x17   :  { %108 = vmatpush.msra.mxu1 %v73_v11 }
  0x18   :  { %89 = vmatpush.msra.mxu0 %v56_v12 }
  0x19   :  { %109 = vmatpush.msra.mxu1 %v72_v13 }
  0x1a   :  { %90 = vmatpush.msra.mxu0 %v55_v14 }
  0x1b   :  { %110 = vmatpush.msra.mxu1 %v71_v15 }
  0x1c   :  { %91 = vmatpush.msra.mxu0 %v54_v16 }
  0x1d   :  { %111 = vmatpush.msra.mxu1 %v70_v17 }
  0x1e   :  { %92 = vmatpush.msra.mxu0 %v53_v18 }
  0x1f   :  { %112 = vmatpush.msra.mxu1 %v69_v19 }
  0x20   :  { %93 = vmatpush.msra.mxu0 %v52_v20 }
  0x21   :  { %113 = vmatpush.msra.mxu1 %v68_v21 }
  0x22   :  { %94 = vmatpush.msra.mxu0 %v51_v22 }
  0x23   :  { %114 = vmatpush.msra.mxu1 %v67_v23 }
  0x24   :  { %95 = vmatpush.msra.mxu0 %v50_v24 }
  0x25   :  { %115 = vmatpush.msra.mxu1 %v66_v25 }
  0x26   :  { %96 = vmatpush.msra.mxu0 %v49_v26 }
  0x27   :  { %116 = vmatpush.msra.mxu1 %v65_v27 }
  0x28   :  { %97 = vmatpush.msra.mxu0 %v48_v28 }
  0x29   :  { %117 = vmatpush.msra.mxu1 %v64_v29 }
  0x2a   :  { %98 = vmatpush.msra.mxu0 %v47_v30 }
  0x2b   :  { %118 = vmatpush.msra.mxu1 %v63_v31  ;;  %99 = vmatmul.f32.vlgmr.msra.gmra.mxu0 %v45_v32 }
  0x2c   :  { %119 = vmatmul.f32.vlgmr.msra.gmra.mxu1 %v46_v33 }
  0xa8   :  { %v100_v35 = vpop.f32.mrf.mxu0 }
  0xa9   :  { %v120_v36 = vpop.f32.mrf.mxu1  ;;  %v101_v37 = vadd.f32 %v147_v34, %v100_v35 }
  0xab   :  { %v121_v38 = vadd.f32 %v120_v36, %v101_v37 }
  0xad   :  { %123 = vst [vmem:[#allocation7] sm:$0xff] %v121_v38 }
  0xae   :  { %134 = dma.vmem_to_hbm [thread:$0]  %s130_s25, 128, %s132_s28, [#allocation4]  }
  0xaf   :  { %224 = dma.done.wait [#allocation4], 128  }
  0xb0   :  { %225 = vsyncadd [#allocation4], 4294967168 }
  0xb1   :  { %139 = vsyncpa [#allocation3], 1 }
  0xb2   :  { %140 = vsyncpa [#allocation6], 1 }
  0xb3   :  { %141 = vsyncpa [#allocation4], 1 }

</bundles_post_ra>
